<compile_context>
chip_gen: v5e
topology: v5e:2x2
jax: 0.10.0
libtpu: 0.0.40
codegen_flags: <defaults>
</compile_context>

<pallas_src>
import jax
import jax.numpy as jnp
from jax.experimental import pallas as pl
from jax.experimental.pallas import tpu as pltpu

CONTEXT_SIZE = 5
EMBED_SIZE = 32          # small stand-in for 100
HIDDEN_SIZE = 128        # small stand-in for 300 (128-aligned)
VOCAB_SIZE = 512         # small stand-in for the Word2Vec vocab (128-aligned)
BATCH = 8


def _nnlm_kernel(ids_ref, emb_ref, w1_ref, b1_ref, w2_ref, b2_ref, o_ref,
                 xc_ref):
    """Fused  relu(gather(emb, ids) @ W1 + b1) @ W2 + b2  in one program.

    ids_ref : (B, C) int32 in SMEM          emb_ref : (V, E) f32 in VMEM
    w1_ref  : (C*E, H) bf16                 w2_ref  : (H, V) bf16
    b1_ref  : (1, H) f32                    b2_ref  : (1, V) f32
    o_ref   : (B, V) f32                    xc_ref  : (B, E) f32 VMEM scratch
    """
    B, E = xc_ref.shape
    C = ids_ref.shape[1]
    H = w1_ref.shape[1]

    acc = jnp.zeros((B, H), jnp.float32)
    for c in range(C):                       # static unroll over context slots
        # Gather this slot's B embedding rows (dynamic sublane reads).
        for b in range(B):                   # static unroll over batch rows
            xc_ref[pl.ds(b, 1), :] = emb_ref[pl.ds(ids_ref[b, c], 1), :]
        # Per-slot (B,E)@(E,H) on the bf16 MXU path, f32 accumulation.
        acc = acc + jnp.dot(xc_ref[...].astype(w1_ref.dtype),
                            w1_ref[pl.ds(c * E, E), :],
                            preferred_element_type=jnp.float32)

    # Bias + ReLU in f32 on the VPU (dropout = identity in eval mode).
    h = jnp.maximum(acc + b1_ref[...], 0.0)

    # Second layer: bf16 MXU, f32 accumulation, f32 bias; one unmasked
    # lane-dense (B, 512) store.
    o_ref[...] = (jnp.dot(h.astype(w2_ref.dtype), w2_ref[...],
                          preferred_element_type=jnp.float32)
                  + b2_ref[...]).astype(o_ref.dtype)


@jax.jit
def nnlm_forward(token_ids, emb_table, w1_bf, b1, w2_bf, b2):
    B, C = token_ids.shape
    V, E = emb_table.shape
    CE = C * E
    H = w1_bf.shape[1]
    Vout = w2_bf.shape[1]

    b1_2d = b1.reshape(1, H)
    b2_2d = b2.reshape(1, Vout)

    cost = pl.CostEstimate(
        flops=2 * B * (CE * H + H * Vout),
        transcendentals=0,
        bytes_accessed=(4 * B * C            # token ids
                        + 4 * V * E          # f32 embedding table
                        + 2 * CE * H + 4 * H # bf16 W1 + f32 b1
                        + 2 * H * Vout + 4 * Vout  # bf16 W2 + f32 b2
                        + 4 * B * Vout),     # f32 logits
    )

    smem_spec = pl.BlockSpec(memory_space=pltpu.MemorySpace.SMEM)
    vmem_spec = pl.BlockSpec(memory_space=pltpu.MemorySpace.VMEM)

    return pl.pallas_call(
        _nnlm_kernel,
        out_shape=jax.ShapeDtypeStruct((B, Vout), jnp.float32),
        in_specs=[smem_spec,                 # token ids -> SMEM (scalar reads)
                  vmem_spec, vmem_spec, vmem_spec, vmem_spec, vmem_spec],
        out_specs=vmem_spec,
        scratch_shapes=[pltpu.VMEM((B, E), jnp.float32)],
        cost_estimate=cost,
    )(token_ids, emb_table, w1_bf, b1_2d, w2_bf, b2_2d)


def _reference(token_ids, emb_table, w1_bf, b1, w2_bf, b2):
    """Matching-precision reference (bf16 weights, f32 accumulation)."""
    B = token_ids.shape[0]
    embeds = jnp.take(emb_table, token_ids, axis=0).reshape(B, -1)
    h = jnp.maximum(
        jnp.dot(embeds.astype(jnp.bfloat16), w1_bf,
                preferred_element_type=jnp.float32) + b1, 0.0)
    return jnp.dot(h.astype(jnp.bfloat16), w2_bf,
                   preferred_element_type=jnp.float32) + b2


if __name__ == "__main__":
    key = jax.random.PRNGKey(0)
    k_emb, k_w1, k_b1, k_w2, k_b2, k_ids = jax.random.split(key, 6)

    CE = CONTEXT_SIZE * EMBED_SIZE

    # Deterministic parameter init (roughly matching PyTorch default scales).
    emb_table = jax.random.normal(k_emb, (VOCAB_SIZE, EMBED_SIZE), jnp.float32)
    w1 = jax.random.uniform(k_w1, (CE, HIDDEN_SIZE), jnp.float32,
                            -1.0 / jnp.sqrt(CE), 1.0 / jnp.sqrt(CE))
    b1 = jax.random.uniform(k_b1, (HIDDEN_SIZE,), jnp.float32,
                            -1.0 / jnp.sqrt(CE), 1.0 / jnp.sqrt(CE))
    w2 = jax.random.uniform(k_w2, (HIDDEN_SIZE, VOCAB_SIZE), jnp.float32,
                            -1.0 / jnp.sqrt(HIDDEN_SIZE),
                            1.0 / jnp.sqrt(HIDDEN_SIZE))
    b2 = jax.random.uniform(k_b2, (VOCAB_SIZE,), jnp.float32,
                            -1.0 / jnp.sqrt(HIDDEN_SIZE),
                            1.0 / jnp.sqrt(HIDDEN_SIZE))

    # One-time weight cast (parameter prep, not a per-call conversion).
    w1_bf = w1.astype(jnp.bfloat16)
    w2_bf = w2.astype(jnp.bfloat16)

    token_ids = jax.random.randint(k_ids, (BATCH, CONTEXT_SIZE), 0, VOCAB_SIZE,
                                   dtype=jnp.int32)

    logits = nnlm_forward(token_ids, emb_table, w1_bf, b1, w2_bf, b2)
    jax.block_until_ready(logits)

    ref = _reference(token_ids, emb_table, w1_bf, b1, w2_bf, b2)
    assert logits.shape == (BATCH, VOCAB_SIZE)
    assert jnp.allclose(logits, ref, atol=1e-2, rtol=1e-2)

    print("KERNEL_OK")
</pallas_src>

<mosaic_0001>
module attributes {stable_mosaic.version = 11 : i64} {
  func.func @_nnlm_kernel(%arg0: memref<8x5xi32, #tpu.memory_space<smem>>, %arg1: memref<512x32xf32, #tpu.memory_space<vmem>>, %arg2: memref<160x128xbf16, #tpu.memory_space<vmem>>, %arg3: memref<1x128xf32, #tpu.memory_space<vmem>>, %arg4: memref<128x512xbf16, #tpu.memory_space<vmem>>, %arg5: memref<1x512xf32, #tpu.memory_space<vmem>>, %arg6: memref<8x512xf32, #tpu.memory_space<vmem>>, %arg7: memref<8x32xf32, #tpu.memory_space<vmem>>) attributes {dimension_semantics = [], scalar_prefetch = 0 : i64, scratch_operands = 1 : i64, tpu.core_type = #tpu.core_type<tc>} {
    %cst = arith.constant 0.000000e+00 : f32
    %0 = vector.broadcast %cst : f32 to vector<8x128xf32>
    %c0 = arith.constant 0 : index
    %c0_0 = arith.constant 0 : index
    %1 = memref.load %arg0[%c0, %c0_0] : memref<8x5xi32, #tpu.memory_space<smem>>
    %2 = arith.index_cast %1 : i32 to index
    %c0_1 = arith.constant 0 : index
    %3 = vector.load %arg1[%2, %c0_1] : memref<512x32xf32, #tpu.memory_space<vmem>>, vector<1x32xf32>
    %c0_2 = arith.constant 0 : index
    %c0_3 = arith.constant 0 : index
    %4 = vector.load %arg7[%c0_2, %c0_3] : memref<8x32xf32, #tpu.memory_space<vmem>>, vector<1x32xf32>
    tpu.vector_store %arg7[%c0_2, %c0_3], %3 {strides = array<i32>} : memref<8x32xf32, #tpu.memory_space<vmem>>, vector<1x32xf32>,
    %c1 = arith.constant 1 : index
    %c0_4 = arith.constant 0 : index
    %5 = memref.load %arg0[%c1, %c0_4] : memref<8x5xi32, #tpu.memory_space<smem>>
    %6 = arith.index_cast %5 : i32 to index
    %c0_5 = arith.constant 0 : index
    %7 = vector.load %arg1[%6, %c0_5] : memref<512x32xf32, #tpu.memory_space<vmem>>, vector<1x32xf32>
    %c1_6 = arith.constant 1 : index
    %c0_7 = arith.constant 0 : index
    %8 = vector.load %arg7[%c1_6, %c0_7] : memref<8x32xf32, #tpu.memory_space<vmem>>, vector<1x32xf32>
    tpu.vector_store %arg7[%c1_6, %c0_7], %7 {strides = array<i32>} : memref<8x32xf32, #tpu.memory_space<vmem>>, vector<1x32xf32>,
    %c2 = arith.constant 2 : index
    %c0_8 = arith.constant 0 : index
    %9 = memref.load %arg0[%c2, %c0_8] : memref<8x5xi32, #tpu.memory_space<smem>>
    %10 = arith.index_cast %9 : i32 to index
    %c0_9 = arith.constant 0 : index
    %11 = vector.load %arg1[%10, %c0_9] : memref<512x32xf32, #tpu.memory_space<vmem>>, vector<1x32xf32>
    %c2_10 = arith.constant 2 : index
    %c0_11 = arith.constant 0 : index
    %12 = vector.load %arg7[%c2_10, %c0_11] : memref<8x32xf32, #tpu.memory_space<vmem>>, vector<1x32xf32>
    tpu.vector_store %arg7[%c2_10, %c0_11], %11 {strides = array<i32>} : memref<8x32xf32, #tpu.memory_space<vmem>>, vector<1x32xf32>,
    %c3 = arith.constant 3 : index
    %c0_12 = arith.constant 0 : index
    %13 = memref.load %arg0[%c3, %c0_12] : memref<8x5xi32, #tpu.memory_space<smem>>
    %14 = arith.index_cast %13 : i32 to index
    %c0_13 = arith.constant 0 : index
    %15 = vector.load %arg1[%14, %c0_13] : memref<512x32xf32, #tpu.memory_space<vmem>>, vector<1x32xf32>
    %c3_14 = arith.constant 3 : index
    %c0_15 = arith.constant 0 : index
    %16 = vector.load %arg7[%c3_14, %c0_15] : memref<8x32xf32, #tpu.memory_space<vmem>>, vector<1x32xf32>
    tpu.vector_store %arg7[%c3_14, %c0_15], %15 {strides = array<i32>} : memref<8x32xf32, #tpu.memory_space<vmem>>, vector<1x32xf32>,
    %c4 = arith.constant 4 : index
    %c0_16 = arith.constant 0 : index
    %17 = memref.load %arg0[%c4, %c0_16] : memref<8x5xi32, #tpu.memory_space<smem>>
    %18 = arith.index_cast %17 : i32 to index
    %c0_17 = arith.constant 0 : index
    %19 = vector.load %arg1[%18, %c0_17] : memref<512x32xf32, #tpu.memory_space<vmem>>, vector<1x32xf32>
    %c4_18 = arith.constant 4 : index
    %c0_19 = arith.constant 0 : index
    %20 = vector.load %arg7[%c4_18, %c0_19] : memref<8x32xf32, #tpu.memory_space<vmem>>, vector<1x32xf32>
    tpu.vector_store %arg7[%c4_18, %c0_19], %19 {strides = array<i32>} : memref<8x32xf32, #tpu.memory_space<vmem>>, vector<1x32xf32>,
    %c5 = arith.constant 5 : index
    %c0_20 = arith.constant 0 : index
    %21 = memref.load %arg0[%c5, %c0_20] : memref<8x5xi32, #tpu.memory_space<smem>>
    %22 = arith.index_cast %21 : i32 to index
    %c0_21 = arith.constant 0 : index
    %23 = vector.load %arg1[%22, %c0_21] : memref<512x32xf32, #tpu.memory_space<vmem>>, vector<1x32xf32>
    %c5_22 = arith.constant 5 : index
    %c0_23 = arith.constant 0 : index
    %24 = vector.load %arg7[%c5_22, %c0_23] : memref<8x32xf32, #tpu.memory_space<vmem>>, vector<1x32xf32>
    tpu.vector_store %arg7[%c5_22, %c0_23], %23 {strides = array<i32>} : memref<8x32xf32, #tpu.memory_space<vmem>>, vector<1x32xf32>,
    %c6 = arith.constant 6 : index
    %c0_24 = arith.constant 0 : index
    %25 = memref.load %arg0[%c6, %c0_24] : memref<8x5xi32, #tpu.memory_space<smem>>
    %26 = arith.index_cast %25 : i32 to index
    %c0_25 = arith.constant 0 : index
    %27 = vector.load %arg1[%26, %c0_25] : memref<512x32xf32, #tpu.memory_space<vmem>>, vector<1x32xf32>
    %c6_26 = arith.constant 6 : index
    %c0_27 = arith.constant 0 : index
    %28 = vector.load %arg7[%c6_26, %c0_27] : memref<8x32xf32, #tpu.memory_space<vmem>>, vector<1x32xf32>
    tpu.vector_store %arg7[%c6_26, %c0_27], %27 {strides = array<i32>} : memref<8x32xf32, #tpu.memory_space<vmem>>, vector<1x32xf32>,
    %c7 = arith.constant 7 : index
    %c0_28 = arith.constant 0 : index
    %29 = memref.load %arg0[%c7, %c0_28] : memref<8x5xi32, #tpu.memory_space<smem>>
    %30 = arith.index_cast %29 : i32 to index
    %c0_29 = arith.constant 0 : index
    %31 = vector.load %arg1[%30, %c0_29] : memref<512x32xf32, #tpu.memory_space<vmem>>, vector<1x32xf32>
    %c7_30 = arith.constant 7 : index
    %c0_31 = arith.constant 0 : index
    %32 = vector.load %arg7[%c7_30, %c0_31] : memref<8x32xf32, #tpu.memory_space<vmem>>, vector<1x32xf32>
    tpu.vector_store %arg7[%c7_30, %c0_31], %31 {strides = array<i32>} : memref<8x32xf32, #tpu.memory_space<vmem>>, vector<1x32xf32>,
    %c0_32 = arith.constant 0 : index
    %c0_33 = arith.constant 0 : index
    %33 = vector.load %arg7[%c0_32, %c0_33] : memref<8x32xf32, #tpu.memory_space<vmem>>, vector<8x32xf32>
    %34 = arith.truncf %33 : vector<8x32xf32> to vector<8x32xbf16>
    %c0_34 = arith.constant 0 : index
    %c0_35 = arith.constant 0 : index
    %35 = vector.load %arg2[%c0_34, %c0_35] : memref<160x128xbf16, #tpu.memory_space<vmem>>, vector<32x128xbf16>
    %cst_36 = arith.constant dense<0.000000e+00> : vector<8x128xf32>
    %36 = tpu.matmul %34, %35, %cst_36 {dimension_numbers = #tpu.dot_dimension_numbers<[1], [0], [0], [1], [0, 0, 1, 1], [], []>} : vector<8x32xbf16>, vector<32x128xbf16>, vector<8x128xf32> -> vector<8x128xf32>
    %37 = arith.addf %0, %36 : vector<8x128xf32>
    %c0_37 = arith.constant 0 : index
    %c1_38 = arith.constant 1 : index
    %38 = memref.load %arg0[%c0_37, %c1_38] : memref<8x5xi32, #tpu.memory_space<smem>>
    %39 = arith.index_cast %38 : i32 to index
    %c0_39 = arith.constant 0 : index
    %40 = vector.load %arg1[%39, %c0_39] : memref<512x32xf32, #tpu.memory_space<vmem>>, vector<1x32xf32>
    %c0_40 = arith.constant 0 : index
    %c0_41 = arith.constant 0 : index
    %41 = vector.load %arg7[%c0_40, %c0_41] : memref<8x32xf32, #tpu.memory_space<vmem>>, vector<1x32xf32>
    tpu.vector_store %arg7[%c0_40, %c0_41], %40 {strides = array<i32>} : memref<8x32xf32, #tpu.memory_space<vmem>>, vector<1x32xf32>,
    %c1_42 = arith.constant 1 : index
    %c1_43 = arith.constant 1 : index
    %42 = memref.load %arg0[%c1_42, %c1_43] : memref<8x5xi32, #tpu.memory_space<smem>>
    %43 = arith.index_cast %42 : i32 to index
    %c0_44 = arith.constant 0 : index
    %44 = vector.load %arg1[%43, %c0_44] : memref<512x32xf32, #tpu.memory_space<vmem>>, vector<1x32xf32>
    %c1_45 = arith.constant 1 : index
    %c0_46 = arith.constant 0 : index
    %45 = vector.load %arg7[%c1_45, %c0_46] : memref<8x32xf32, #tpu.memory_space<vmem>>, vector<1x32xf32>
    tpu.vector_store %arg7[%c1_45, %c0_46], %44 {strides = array<i32>} : memref<8x32xf32, #tpu.memory_space<vmem>>, vector<1x32xf32>,
    %c2_47 = arith.constant 2 : index
    %c1_48 = arith.constant 1 : index
    %46 = memref.load %arg0[%c2_47, %c1_48] : memref<8x5xi32, #tpu.memory_space<smem>>
    %47 = arith.index_cast %46 : i32 to index
    %c0_49 = arith.constant 0 : index
    %48 = vector.load %arg1[%47, %c0_49] : memref<512x32xf32, #tpu.memory_space<vmem>>, vector<1x32xf32>
    %c2_50 = arith.constant 2 : index
    %c0_51 = arith.constant 0 : index
    %49 = vector.load %arg7[%c2_50, %c0_51] : memref<8x32xf32, #tpu.memory_space<vmem>>, vector<1x32xf32>
    tpu.vector_store %arg7[%c2_50, %c0_51], %48 {strides = array<i32>} : memref<8x32xf32, #tpu.memory_space<vmem>>, vector<1x32xf32>,
    %c3_52 = arith.constant 3 : index
    %c1_53 = arith.constant 1 : index
    %50 = memref.load %arg0[%c3_52, %c1_53] : memref<8x5xi32, #tpu.memory_space<smem>>
    %51 = arith.index_cast %50 : i32 to index
    %c0_54 = arith.constant 0 : index
    %52 = vector.load %arg1[%51, %c0_54] : memref<512x32xf32, #tpu.memory_space<vmem>>, vector<1x32xf32>
    %c3_55 = arith.constant 3 : index
    %c0_56 = arith.constant 0 : index
    %53 = vector.load %arg7[%c3_55, %c0_56] : memref<8x32xf32, #tpu.memory_space<vmem>>, vector<1x32xf32>
    tpu.vector_store %arg7[%c3_55, %c0_56], %52 {strides = array<i32>} : memref<8x32xf32, #tpu.memory_space<vmem>>, vector<1x32xf32>,
    %c4_57 = arith.constant 4 : index
    %c1_58 = arith.constant 1 : index
    %54 = memref.load %arg0[%c4_57, %c1_58] : memref<8x5xi32, #tpu.memory_space<smem>>
    %55 = arith.index_cast %54 : i32 to index
    %c0_59 = arith.constant 0 : index
    %56 = vector.load %arg1[%55, %c0_59] : memref<512x32xf32, #tpu.memory_space<vmem>>, vector<1x32xf32>
    %c4_60 = arith.constant 4 : index
    %c0_61 = arith.constant 0 : index
    %57 = vector.load %arg7[%c4_60, %c0_61] : memref<8x32xf32, #tpu.memory_space<vmem>>, vector<1x32xf32>
    tpu.vector_store %arg7[%c4_60, %c0_61], %56 {strides = array<i32>} : memref<8x32xf32, #tpu.memory_space<vmem>>, vector<1x32xf32>,
    %c5_62 = arith.constant 5 : index
    %c1_63 = arith.constant 1 : index
    %58 = memref.load %arg0[%c5_62, %c1_63] : memref<8x5xi32, #tpu.memory_space<smem>>
    %59 = arith.index_cast %58 : i32 to index
    %c0_64 = arith.constant 0 : index
    %60 = vector.load %arg1[%59, %c0_64] : memref<512x32xf32, #tpu.memory_space<vmem>>, vector<1x32xf32>
    %c5_65 = arith.constant 5 : index
    %c0_66 = arith.constant 0 : index
    %61 = vector.load %arg7[%c5_65, %c0_66] : memref<8x32xf32, #tpu.memory_space<vmem>>, vector<1x32xf32>
    tpu.vector_store %arg7[%c5_65, %c0_66], %60 {strides = array<i32>} : memref<8x32xf32, #tpu.memory_space<vmem>>, vector<1x32xf32>,
    %c6_67 = arith.constant 6 : index
    %c1_68 = arith.constant 1 : index
    %62 = memref.load %arg0[%c6_67, %c1_68] : memref<8x5xi32, #tpu.memory_space<smem>>
    %63 = arith.index_cast %62 : i32 to index
    %c0_69 = arith.constant 0 : index
    %64 = vector.load %arg1[%63, %c0_69] : memref<512x32xf32, #tpu.memory_space<vmem>>, vector<1x32xf32>
    %c6_70 = arith.constant 6 : index
    %c0_71 = arith.constant 0 : index
    %65 = vector.load %arg7[%c6_70, %c0_71] : memref<8x32xf32, #tpu.memory_space<vmem>>, vector<1x32xf32>
    tpu.vector_store %arg7[%c6_70, %c0_71], %64 {strides = array<i32>} : memref<8x32xf32, #tpu.memory_space<vmem>>, vector<1x32xf32>,
    %c7_72 = arith.constant 7 : index
    %c1_73 = arith.constant 1 : index
    %66 = memref.load %arg0[%c7_72, %c1_73] : memref<8x5xi32, #tpu.memory_space<smem>>
    %67 = arith.index_cast %66 : i32 to index
    %c0_74 = arith.constant 0 : index
    %68 = vector.load %arg1[%67, %c0_74] : memref<512x32xf32, #tpu.memory_space<vmem>>, vector<1x32xf32>
    %c7_75 = arith.constant 7 : index
    %c0_76 = arith.constant 0 : index
    %69 = vector.load %arg7[%c7_75, %c0_76] : memref<8x32xf32, #tpu.memory_space<vmem>>, vector<1x32xf32>
    tpu.vector_store %arg7[%c7_75, %c0_76], %68 {strides = array<i32>} : memref<8x32xf32, #tpu.memory_space<vmem>>, vector<1x32xf32>,
    %c0_77 = arith.constant 0 : index
    %c0_78 = arith.constant 0 : index
    %70 = vector.load %arg7[%c0_77, %c0_78] : memref<8x32xf32, #tpu.memory_space<vmem>>, vector<8x32xf32>
    %71 = arith.truncf %70 : vector<8x32xf32> to vector<8x32xbf16>
    %c32 = arith.constant 32 : index
    %c0_79 = arith.constant 0 : index
    %72 = vector.load %arg2[%c32, %c0_79] : memref<160x128xbf16, #tpu.memory_space<vmem>>, vector<32x128xbf16>
    %cst_80 = arith.constant dense<0.000000e+00> : vector<8x128xf32>
    %73 = tpu.matmul %71, %72, %cst_80 {dimension_numbers = #tpu.dot_dimension_numbers<[1], [0], [0], [1], [0, 0, 1, 1], [], []>} : vector<8x32xbf16>, vector<32x128xbf16>, vector<8x128xf32> -> vector<8x128xf32>
    %74 = arith.addf %37, %73 : vector<8x128xf32>
    %c0_81 = arith.constant 0 : index
    %c2_82 = arith.constant 2 : index
    %75 = memref.load %arg0[%c0_81, %c2_82] : memref<8x5xi32, #tpu.memory_space<smem>>
    %76 = arith.index_cast %75 : i32 to index
    %c0_83 = arith.constant 0 : index
    %77 = vector.load %arg1[%76, %c0_83] : memref<512x32xf32, #tpu.memory_space<vmem>>, vector<1x32xf32>
    %c0_84 = arith.constant 0 : index
    %c0_85 = arith.constant 0 : index
    %78 = vector.load %arg7[%c0_84, %c0_85] : memref<8x32xf32, #tpu.memory_space<vmem>>, vector<1x32xf32>
    tpu.vector_store %arg7[%c0_84, %c0_85], %77 {strides = array<i32>} : memref<8x32xf32, #tpu.memory_space<vmem>>, vector<1x32xf32>,
    %c1_86 = arith.constant 1 : index
    %c2_87 = arith.constant 2 : index
    %79 = memref.load %arg0[%c1_86, %c2_87] : memref<8x5xi32, #tpu.memory_space<smem>>
    %80 = arith.index_cast %79 : i32 to index
    %c0_88 = arith.constant 0 : index
    %81 = vector.load %arg1[%80, %c0_88] : memref<512x32xf32, #tpu.memory_space<vmem>>, vector<1x32xf32>
    %c1_89 = arith.constant 1 : index
    %c0_90 = arith.constant 0 : index
    %82 = vector.load %arg7[%c1_89, %c0_90] : memref<8x32xf32, #tpu.memory_space<vmem>>, vector<1x32xf32>
    tpu.vector_store %arg7[%c1_89, %c0_90], %81 {strides = array<i32>} : memref<8x32xf32, #tpu.memory_space<vmem>>, vector<1x32xf32>,
    %c2_91 = arith.constant 2 : index
    %c2_92 = arith.constant 2 : index
    %83 = memref.load %arg0[%c2_91, %c2_92] : memref<8x5xi32, #tpu.memory_space<smem>>
    %84 = arith.index_cast %83 : i32 to index
    %c0_93 = arith.constant 0 : index
    %85 = vector.load %arg1[%84, %c0_93] : memref<512x32xf32, #tpu.memory_space<vmem>>, vector<1x32xf32>
    %c2_94 = arith.constant 2 : index
    %c0_95 = arith.constant 0 : index
    %86 = vector.load %arg7[%c2_94, %c0_95] : memref<8x32xf32, #tpu.memory_space<vmem>>, vector<1x32xf32>
    tpu.vector_store %arg7[%c2_94, %c0_95], %85 {strides = array<i32>} : memref<8x32xf32, #tpu.memory_space<vmem>>, vector<1x32xf32>,
    %c3_96 = arith.constant 3 : index
    %c2_97 = arith.constant 2 : index
    %87 = memref.load %arg0[%c3_96, %c2_97] : memref<8x5xi32, #tpu.memory_space<smem>>
    %88 = arith.index_cast %87 : i32 to index
    %c0_98 = arith.constant 0 : index
    %89 = vector.load %arg1[%88, %c0_98] : memref<512x32xf32, #tpu.memory_space<vmem>>, vector<1x32xf32>
    %c3_99 = arith.constant 3 : index
    %c0_100 = arith.constant 0 : index
    %90 = vector.load %arg7[%c3_99, %c0_100] : memref<8x32xf32, #tpu.memory_space<vmem>>, vector<1x32xf32>
    tpu.vector_store %arg7[%c3_99, %c0_100], %89 {strides = array<i32>} : memref<8x32xf32, #tpu.memory_space<vmem>>, vector<1x32xf32>,
    %c4_101 = arith.constant 4 : index
    %c2_102 = arith.constant 2 : index
    %91 = memref.load %arg0[%c4_101, %c2_102] : memref<8x5xi32, #tpu.memory_space<smem>>
    %92 = arith.index_cast %91 : i32 to index
    %c0_103 = arith.constant 0 : index
    %93 = vector.load %arg1[%92, %c0_103] : memref<512x32xf32, #tpu.memory_space<vmem>>, vector<1x32xf32>
    %c4_104 = arith.constant 4 : index
    %c0_105 = arith.constant 0 : index
    %94 = vector.load %arg7[%c4_104, %c0_105] : memref<8x32xf32, #tpu.memory_space<vmem>>, vector<1x32xf32>
    tpu.vector_store %arg7[%c4_104, %c0_105], %93 {strides = array<i32>} : memref<8x32xf32, #tpu.memory_space<vmem>>, vector<1x32xf32>,
    %c5_106 = arith.constant 5 : index
    %c2_107 = arith.constant 2 : index
    %95 = memref.load %arg0[%c5_106, %c2_107] : memref<8x5xi32, #tpu.memory_space<smem>>
    %96 = arith.index_cast %95 : i32 to index
    %c0_108 = arith.constant 0 : index
    %97 = vector.load %arg1[%96, %c0_108] : memref<512x32xf32, #tpu.memory_space<vmem>>, vector<1x32xf32>
    %c5_109 = arith.constant 5 : index
    %c0_110 = arith.constant 0 : index
    %98 = vector.load %arg7[%c5_109, %c0_110] : memref<8x32xf32, #tpu.memory_space<vmem>>, vector<1x32xf32>
    tpu.vector_store %arg7[%c5_109, %c0_110], %97 {strides = array<i32>} : memref<8x32xf32, #tpu.memory_space<vmem>>, vector<1x32xf32>,
    %c6_111 = arith.constant 6 : index
    %c2_112 = arith.constant 2 : index
    %99 = memref.load %arg0[%c6_111, %c2_112] : memref<8x5xi32, #tpu.memory_space<smem>>
    %100 = arith.index_cast %99 : i32 to index
    %c0_113 = arith.constant 0 : index
    %101 = vector.load %arg1[%100, %c0_113] : memref<512x32xf32, #tpu.memory_space<vmem>>, vector<1x32xf32>
    %c6_114 = arith.constant 6 : index
    %c0_115 = arith.constant 0 : index
    %102 = vector.load %arg7[%c6_114, %c0_115] : memref<8x32xf32, #tpu.memory_space<vmem>>, vector<1x32xf32>
    tpu.vector_store %arg7[%c6_114, %c0_115], %101 {strides = array<i32>} : memref<8x32xf32, #tpu.memory_space<vmem>>, vector<1x32xf32>,
    %c7_116 = arith.constant 7 : index
    %c2_117 = arith.constant 2 : index
    %103 = memref.load %arg0[%c7_116, %c2_117] : memref<8x5xi32, #tpu.memory_space<smem>>
    %104 = arith.index_cast %103 : i32 to index
    %c0_118 = arith.constant 0 : index
    %105 = vector.load %arg1[%104, %c0_118] : memref<512x32xf32, #tpu.memory_space<vmem>>, vector<1x32xf32>
    %c7_119 = arith.constant 7 : index
    %c0_120 = arith.constant 0 : index
    %106 = vector.load %arg7[%c7_119, %c0_120] : memref<8x32xf32, #tpu.memory_space<vmem>>, vector<1x32xf32>
    tpu.vector_store %arg7[%c7_119, %c0_120], %105 {strides = array<i32>} : memref<8x32xf32, #tpu.memory_space<vmem>>, vector<1x32xf32>,
    %c0_121 = arith.constant 0 : index
    %c0_122 = arith.constant 0 : index
    %107 = vector.load %arg7[%c0_121, %c0_122] : memref<8x32xf32, #tpu.memory_space<vmem>>, vector<8x32xf32>
    %108 = arith.truncf %107 : vector<8x32xf32> to vector<8x32xbf16>
    %c64 = arith.constant 64 : index
    %c0_123 = arith.constant 0 : index
    %109 = vector.load %arg2[%c64, %c0_123] : memref<160x128xbf16, #tpu.memory_space<vmem>>, vector<32x128xbf16>
    %cst_124 = arith.constant dense<0.000000e+00> : vector<8x128xf32>
    %110 = tpu.matmul %108, %109, %cst_124 {dimension_numbers = #tpu.dot_dimension_numbers<[1], [0], [0], [1], [0, 0, 1, 1], [], []>} : vector<8x32xbf16>, vector<32x128xbf16>, vector<8x128xf32> -> vector<8x128xf32>
    %111 = arith.addf %74, %110 : vector<8x128xf32>
    %c0_125 = arith.constant 0 : index
    %c3_126 = arith.constant 3 : index
    %112 = memref.load %arg0[%c0_125, %c3_126] : memref<8x5xi32, #tpu.memory_space<smem>>
    %113 = arith.index_cast %112 : i32 to index
    %c0_127 = arith.constant 0 : index
    %114 = vector.load %arg1[%113, %c0_127] : memref<512x32xf32, #tpu.memory_space<vmem>>, vector<1x32xf32>
    %c0_128 = arith.constant 0 : index
    %c0_129 = arith.constant 0 : index
    %115 = vector.load %arg7[%c0_128, %c0_129] : memref<8x32xf32, #tpu.memory_space<vmem>>, vector<1x32xf32>
    tpu.vector_store %arg7[%c0_128, %c0_129], %114 {strides = array<i32>} : memref<8x32xf32, #tpu.memory_space<vmem>>, vector<1x32xf32>,
    %c1_130 = arith.constant 1 : index
    %c3_131 = arith.constant 3 : index
    %116 = memref.load %arg0[%c1_130, %c3_131] : memref<8x5xi32, #tpu.memory_space<smem>>
    %117 = arith.index_cast %116 : i32 to index
    %c0_132 = arith.constant 0 : index
    %118 = vector.load %arg1[%117, %c0_132] : memref<512x32xf32, #tpu.memory_space<vmem>>, vector<1x32xf32>
    %c1_133 = arith.constant 1 : index
    %c0_134 = arith.constant 0 : index
    %119 = vector.load %arg7[%c1_133, %c0_134] : memref<8x32xf32, #tpu.memory_space<vmem>>, vector<1x32xf32>
    tpu.vector_store %arg7[%c1_133, %c0_134], %118 {strides = array<i32>} : memref<8x32xf32, #tpu.memory_space<vmem>>, vector<1x32xf32>,
    %c2_135 = arith.constant 2 : index
    %c3_136 = arith.constant 3 : index
    %120 = memref.load %arg0[%c2_135, %c3_136] : memref<8x5xi32, #tpu.memory_space<smem>>
    %121 = arith.index_cast %120 : i32 to index
    %c0_137 = arith.constant 0 : index
    %122 = vector.load %arg1[%121, %c0_137] : memref<512x32xf32, #tpu.memory_space<vmem>>, vector<1x32xf32>
    %c2_138 = arith.constant 2 : index
    %c0_139 = arith.constant 0 : index
    %123 = vector.load %arg7[%c2_138, %c0_139] : memref<8x32xf32, #tpu.memory_space<vmem>>, vector<1x32xf32>
    tpu.vector_store %arg7[%c2_138, %c0_139], %122 {strides = array<i32>} : memref<8x32xf32, #tpu.memory_space<vmem>>, vector<1x32xf32>,
    %c3_140 = arith.constant 3 : index
    %c3_141 = arith.constant 3 : index
    %124 = memref.load %arg0[%c3_140, %c3_141] : memref<8x5xi32, #tpu.memory_space<smem>>
    %125 = arith.index_cast %124 : i32 to index
    %c0_142 = arith.constant 0 : index
    %126 = vector.load %arg1[%125, %c0_142] : memref<512x32xf32, #tpu.memory_space<vmem>>, vector<1x32xf32>
    %c3_143 = arith.constant 3 : index
    %c0_144 = arith.constant 0 : index
    %127 = vector.load %arg7[%c3_143, %c0_144] : memref<8x32xf32, #tpu.memory_space<vmem>>, vector<1x32xf32>
    tpu.vector_store %arg7[%c3_143, %c0_144], %126 {strides = array<i32>} : memref<8x32xf32, #tpu.memory_space<vmem>>, vector<1x32xf32>,
    %c4_145 = arith.constant 4 : index
    %c3_146 = arith.constant 3 : index
    %128 = memref.load %arg0[%c4_145, %c3_146] : memref<8x5xi32, #tpu.memory_space<smem>>
    %129 = arith.index_cast %128 : i32 to index
    %c0_147 = arith.constant 0 : index
    %130 = vector.load %arg1[%129, %c0_147] : memref<512x32xf32, #tpu.memory_space<vmem>>, vector<1x32xf32>
    %c4_148 = arith.constant 4 : index
    %c0_149 = arith.constant 0 : index
    %131 = vector.load %arg7[%c4_148, %c0_149] : memref<8x32xf32, #tpu.memory_space<vmem>>, vector<1x32xf32>
    tpu.vector_store %arg7[%c4_148, %c0_149], %130 {strides = array<i32>} : memref<8x32xf32, #tpu.memory_space<vmem>>, vector<1x32xf32>,
    %c5_150 = arith.constant 5 : index
    %c3_151 = arith.constant 3 : index
    %132 = memref.load %arg0[%c5_150, %c3_151] : memref<8x5xi32, #tpu.memory_space<smem>>
    %133 = arith.index_cast %132 : i32 to index
    %c0_152 = arith.constant 0 : index
    %134 = vector.load %arg1[%133, %c0_152] : memref<512x32xf32, #tpu.memory_space<vmem>>, vector<1x32xf32>
    %c5_153 = arith.constant 5 : index
    %c0_154 = arith.constant 0 : index
    %135 = vector.load %arg7[%c5_153, %c0_154] : memref<8x32xf32, #tpu.memory_space<vmem>>, vector<1x32xf32>
    tpu.vector_store %arg7[%c5_153, %c0_154], %134 {strides = array<i32>} : memref<8x32xf32, #tpu.memory_space<vmem>>, vector<1x32xf32>,
    %c6_155 = arith.constant 6 : index
    %c3_156 = arith.constant 3 : index
    %136 = memref.load %arg0[%c6_155, %c3_156] : memref<8x5xi32, #tpu.memory_space<smem>>
    %137 = arith.index_cast %136 : i32 to index
    %c0_157 = arith.constant 0 : index
    %138 = vector.load %arg1[%137, %c0_157] : memref<512x32xf32, #tpu.memory_space<vmem>>, vector<1x32xf32>
    %c6_158 = arith.constant 6 : index
    %c0_159 = arith.constant 0 : index
    %139 = vector.load %arg7[%c6_158, %c0_159] : memref<8x32xf32, #tpu.memory_space<vmem>>, vector<1x32xf32>
    tpu.vector_store %arg7[%c6_158, %c0_159], %138 {strides = array<i32>} : memref<8x32xf32, #tpu.memory_space<vmem>>, vector<1x32xf32>,
    %c7_160 = arith.constant 7 : index
    %c3_161 = arith.constant 3 : index
    %140 = memref.load %arg0[%c7_160, %c3_161] : memref<8x5xi32, #tpu.memory_space<smem>>
    %141 = arith.index_cast %140 : i32 to index
    %c0_162 = arith.constant 0 : index
    %142 = vector.load %arg1[%141, %c0_162] : memref<512x32xf32, #tpu.memory_space<vmem>>, vector<1x32xf32>
    %c7_163 = arith.constant 7 : index
    %c0_164 = arith.constant 0 : index
    %143 = vector.load %arg7[%c7_163, %c0_164] : memref<8x32xf32, #tpu.memory_space<vmem>>, vector<1x32xf32>
    tpu.vector_store %arg7[%c7_163, %c0_164], %142 {strides = array<i32>} : memref<8x32xf32, #tpu.memory_space<vmem>>, vector<1x32xf32>,
    %c0_165 = arith.constant 0 : index
    %c0_166 = arith.constant 0 : index
    %144 = vector.load %arg7[%c0_165, %c0_166] : memref<8x32xf32, #tpu.memory_space<vmem>>, vector<8x32xf32>
    %145 = arith.truncf %144 : vector<8x32xf32> to vector<8x32xbf16>
    %c96 = arith.constant 96 : index
    %c0_167 = arith.constant 0 : index
    %146 = vector.load %arg2[%c96, %c0_167] : memref<160x128xbf16, #tpu.memory_space<vmem>>, vector<32x128xbf16>
    %cst_168 = arith.constant dense<0.000000e+00> : vector<8x128xf32>
    %147 = tpu.matmul %145, %146, %cst_168 {dimension_numbers = #tpu.dot_dimension_numbers<[1], [0], [0], [1], [0, 0, 1, 1], [], []>} : vector<8x32xbf16>, vector<32x128xbf16>, vector<8x128xf32> -> vector<8x128xf32>
    %148 = arith.addf %111, %147 : vector<8x128xf32>
    %c0_169 = arith.constant 0 : index
    %c4_170 = arith.constant 4 : index
    %149 = memref.load %arg0[%c0_169, %c4_170] : memref<8x5xi32, #tpu.memory_space<smem>>
    %150 = arith.index_cast %149 : i32 to index
    %c0_171 = arith.constant 0 : index
    %151 = vector.load %arg1[%150, %c0_171] : memref<512x32xf32, #tpu.memory_space<vmem>>, vector<1x32xf32>
    %c0_172 = arith.constant 0 : index
    %c0_173 = arith.constant 0 : index
    %152 = vector.load %arg7[%c0_172, %c0_173] : memref<8x32xf32, #tpu.memory_space<vmem>>, vector<1x32xf32>
    tpu.vector_store %arg7[%c0_172, %c0_173], %151 {strides = array<i32>} : memref<8x32xf32, #tpu.memory_space<vmem>>, vector<1x32xf32>,
    %c1_174 = arith.constant 1 : index
    %c4_175 = arith.constant 4 : index
    %153 = memref.load %arg0[%c1_174, %c4_175] : memref<8x5xi32, #tpu.memory_space<smem>>
    %154 = arith.index_cast %153 : i32 to index
    %c0_176 = arith.constant 0 : index
    %155 = vector.load %arg1[%154, %c0_176] : memref<512x32xf32, #tpu.memory_space<vmem>>, vector<1x32xf32>
    %c1_177 = arith.constant 1 : index
    %c0_178 = arith.constant 0 : index
    %156 = vector.load %arg7[%c1_177, %c0_178] : memref<8x32xf32, #tpu.memory_space<vmem>>, vector<1x32xf32>
    tpu.vector_store %arg7[%c1_177, %c0_178], %155 {strides = array<i32>} : memref<8x32xf32, #tpu.memory_space<vmem>>, vector<1x32xf32>,
    %c2_179 = arith.constant 2 : index
    %c4_180 = arith.constant 4 : index
    %157 = memref.load %arg0[%c2_179, %c4_180] : memref<8x5xi32, #tpu.memory_space<smem>>
    %158 = arith.index_cast %157 : i32 to index
    %c0_181 = arith.constant 0 : index
    %159 = vector.load %arg1[%158, %c0_181] : memref<512x32xf32, #tpu.memory_space<vmem>>, vector<1x32xf32>
    %c2_182 = arith.constant 2 : index
    %c0_183 = arith.constant 0 : index
    %160 = vector.load %arg7[%c2_182, %c0_183] : memref<8x32xf32, #tpu.memory_space<vmem>>, vector<1x32xf32>
    tpu.vector_store %arg7[%c2_182, %c0_183], %159 {strides = array<i32>} : memref<8x32xf32, #tpu.memory_space<vmem>>, vector<1x32xf32>,
    %c3_184 = arith.constant 3 : index
    %c4_185 = arith.constant 4 : index
    %161 = memref.load %arg0[%c3_184, %c4_185] : memref<8x5xi32, #tpu.memory_space<smem>>
    %162 = arith.index_cast %161 : i32 to index
    %c0_186 = arith.constant 0 : index
    %163 = vector.load %arg1[%162, %c0_186] : memref<512x32xf32, #tpu.memory_space<vmem>>, vector<1x32xf32>
    %c3_187 = arith.constant 3 : index
    %c0_188 = arith.constant 0 : index
    %164 = vector.load %arg7[%c3_187, %c0_188] : memref<8x32xf32, #tpu.memory_space<vmem>>, vector<1x32xf32>
    tpu.vector_store %arg7[%c3_187, %c0_188], %163 {strides = array<i32>} : memref<8x32xf32, #tpu.memory_space<vmem>>, vector<1x32xf32>,
    %c4_189 = arith.constant 4 : index
    %c4_190 = arith.constant 4 : index
    %165 = memref.load %arg0[%c4_189, %c4_190] : memref<8x5xi32, #tpu.memory_space<smem>>
    %166 = arith.index_cast %165 : i32 to index
    %c0_191 = arith.constant 0 : index
    %167 = vector.load %arg1[%166, %c0_191] : memref<512x32xf32, #tpu.memory_space<vmem>>, vector<1x32xf32>
    %c4_192 = arith.constant 4 : index
    %c0_193 = arith.constant 0 : index
    %168 = vector.load %arg7[%c4_192, %c0_193] : memref<8x32xf32, #tpu.memory_space<vmem>>, vector<1x32xf32>
    tpu.vector_store %arg7[%c4_192, %c0_193], %167 {strides = array<i32>} : memref<8x32xf32, #tpu.memory_space<vmem>>, vector<1x32xf32>,
    %c5_194 = arith.constant 5 : index
    %c4_195 = arith.constant 4 : index
    %169 = memref.load %arg0[%c5_194, %c4_195] : memref<8x5xi32, #tpu.memory_space<smem>>
    %170 = arith.index_cast %169 : i32 to index
    %c0_196 = arith.constant 0 : index
    %171 = vector.load %arg1[%170, %c0_196] : memref<512x32xf32, #tpu.memory_space<vmem>>, vector<1x32xf32>
    %c5_197 = arith.constant 5 : index
    %c0_198 = arith.constant 0 : index
    %172 = vector.load %arg7[%c5_197, %c0_198] : memref<8x32xf32, #tpu.memory_space<vmem>>, vector<1x32xf32>
    tpu.vector_store %arg7[%c5_197, %c0_198], %171 {strides = array<i32>} : memref<8x32xf32, #tpu.memory_space<vmem>>, vector<1x32xf32>,
    %c6_199 = arith.constant 6 : index
    %c4_200 = arith.constant 4 : index
    %173 = memref.load %arg0[%c6_199, %c4_200] : memref<8x5xi32, #tpu.memory_space<smem>>
    %174 = arith.index_cast %173 : i32 to index
    %c0_201 = arith.constant 0 : index
    %175 = vector.load %arg1[%174, %c0_201] : memref<512x32xf32, #tpu.memory_space<vmem>>, vector<1x32xf32>
    %c6_202 = arith.constant 6 : index
    %c0_203 = arith.constant 0 : index
    %176 = vector.load %arg7[%c6_202, %c0_203] : memref<8x32xf32, #tpu.memory_space<vmem>>, vector<1x32xf32>
    tpu.vector_store %arg7[%c6_202, %c0_203], %175 {strides = array<i32>} : memref<8x32xf32, #tpu.memory_space<vmem>>, vector<1x32xf32>,
    %c7_204 = arith.constant 7 : index
    %c4_205 = arith.constant 4 : index
    %177 = memref.load %arg0[%c7_204, %c4_205] : memref<8x5xi32, #tpu.memory_space<smem>>
    %178 = arith.index_cast %177 : i32 to index
    %c0_206 = arith.constant 0 : index
    %179 = vector.load %arg1[%178, %c0_206] : memref<512x32xf32, #tpu.memory_space<vmem>>, vector<1x32xf32>
    %c7_207 = arith.constant 7 : index
    %c0_208 = arith.constant 0 : index
    %180 = vector.load %arg7[%c7_207, %c0_208] : memref<8x32xf32, #tpu.memory_space<vmem>>, vector<1x32xf32>
    tpu.vector_store %arg7[%c7_207, %c0_208], %179 {strides = array<i32>} : memref<8x32xf32, #tpu.memory_space<vmem>>, vector<1x32xf32>,
    %c0_209 = arith.constant 0 : index
    %c0_210 = arith.constant 0 : index
    %181 = vector.load %arg7[%c0_209, %c0_210] : memref<8x32xf32, #tpu.memory_space<vmem>>, vector<8x32xf32>
    %182 = arith.truncf %181 : vector<8x32xf32> to vector<8x32xbf16>
    %c128 = arith.constant 128 : index
    %c0_211 = arith.constant 0 : index
    %183 = vector.load %arg2[%c128, %c0_211] : memref<160x128xbf16, #tpu.memory_space<vmem>>, vector<32x128xbf16>
    %cst_212 = arith.constant dense<0.000000e+00> : vector<8x128xf32>
    %184 = tpu.matmul %182, %183, %cst_212 {dimension_numbers = #tpu.dot_dimension_numbers<[1], [0], [0], [1], [0, 0, 1, 1], [], []>} : vector<8x32xbf16>, vector<32x128xbf16>, vector<8x128xf32> -> vector<8x128xf32>
    %185 = arith.addf %148, %184 : vector<8x128xf32>
    %c0_213 = arith.constant 0 : index
    %c0_214 = arith.constant 0 : index
    %186 = vector.load %arg3[%c0_213, %c0_214] : memref<1x128xf32, #tpu.memory_space<vmem>>, vector<1x128xf32>
    %187 = vector.broadcast %186 : vector<1x128xf32> to vector<8x128xf32>
    %188 = arith.addf %185, %187 : vector<8x128xf32>
    %cst_215 = arith.constant 0.000000e+00 : f32
    %189 = vector.broadcast %cst_215 : f32 to vector<8x128xf32>
    %190 = arith.maximumf %188, %189 : vector<8x128xf32>
    %191 = arith.truncf %190 : vector<8x128xf32> to vector<8x128xbf16>
    %c0_216 = arith.constant 0 : index
    %c0_217 = arith.constant 0 : index
    %192 = vector.load %arg4[%c0_216, %c0_217] : memref<128x512xbf16, #tpu.memory_space<vmem>>, vector<128x512xbf16>
    %cst_218 = arith.constant dense<0.000000e+00> : vector<8x512xf32>
    %193 = tpu.matmul %191, %192, %cst_218 {dimension_numbers = #tpu.dot_dimension_numbers<[1], [0], [0], [1], [0, 0, 1, 1], [], []>} : vector<8x128xbf16>, vector<128x512xbf16>, vector<8x512xf32> -> vector<8x512xf32>
    %c0_219 = arith.constant 0 : index
    %c0_220 = arith.constant 0 : index
    %194 = vector.load %arg5[%c0_219, %c0_220] : memref<1x512xf32, #tpu.memory_space<vmem>>, vector<1x512xf32>
    %195 = vector.broadcast %194 : vector<1x512xf32> to vector<8x512xf32>
    %196 = arith.addf %193, %195 : vector<8x512xf32>
    %c0_221 = arith.constant 0 : index
    %c0_222 = arith.constant 0 : index
    %197 = vector.load %arg6[%c0_221, %c0_222] : memref<8x512xf32, #tpu.memory_space<vmem>>, vector<8x512xf32>
    tpu.vector_store %arg6[%c0_221, %c0_222], %196 {strides = array<i32>} : memref<8x512xf32, #tpu.memory_space<vmem>>, vector<8x512xf32>,
    return
  }
}

</mosaic_0001>

<bundles_post_ra>
// kernel: nnlm_forward.1
= control target key start
LH: loop header
LB: loop body
LE: loop exit
PB: predicated region body
PF: predicated region fallthrough
CT: control target
= control target key end

     0   :  { %11 = vsyncpa [#allocation5], 0  ;;  %s1455_s0 = inlined_call_operand.vmem [shape: s32[8,5], index: 0, kind: input, shape index: {}]   ;;  %s1456_s1 = inlined_call_operand.vmem [shape: f32[512,32], index: 1, kind: input, shape index: {}]   ;;  %s1457_s2 = inlined_call_operand.vmem [shape: bf16[160,128], index: 2, kind: input, shape index: {}]   ;;  %s1458_s3 = inlined_call_operand.vmem [shape: f32[1,128], index: 3, kind: input, shape index: {}]   ;;  %s1459_s4 = inlined_call_operand.vmem [shape: bf16[128,512], index: 4, kind: input, shape index: {}]   ;;  %s1460_s5 = inlined_call_operand.vmem [shape: f32[1,512], index: 5, kind: input, shape index: {}]   ;;  %s1461_s6 = inlined_call_operand.hbm [shape: f32[8,512], index: 6, kind: output, shape index: {}]  }
   0x1   :  { %12 = vsyncpa [#allocation4], 0  ;;  %s18_s23 = sshll.u32 %s1455_s0, 4  ;;  %s992_s24 = smov [#allocation3]   ;;  %s19_s23 = int_to_ptr.vmem [resolvable:$true] %s18_s23 }
   0x2   :  { %21 = dma.vmem_to_smem %s19_s23, 128, %s992_s24, [#allocation5]  }
   0x3   :  { %988 = dma.done.wait [#allocation5], 128  }
   0x4   :  { %989 = vsyncadd [#allocation5], 4294967168 }
   0x5   :  { %36 = sfence }
   0x6   :  { %v910_v0 = vld [vmem:[%s1457_s2 + $0x18] sm:$0xff]  ;;  %s38_s27 = sld [smem:[#allocation3]]  ;;  %v909_v1 = vld [vmem:[%s1457_s2 + $0x10] sm:$0xff]  ;;  %vm41_vm0 = vcmask 253952   ;;  %v908_v3 = vld [vmem:[%s1457_s2 + $0x8] sm:$0xff]  ;;  %vm127_vm1 = vcmask 261120  }
   0x7   :  { %s695_s28 = sld [smem:[#allocation3 + $0x80]]  ;;  %137 = vmatpush.bf16.msra.mxu0 %v910_v0  ;;  %v912_v4 = vld [vmem:[%s1457_s2 + $0x28] sm:$0xff]  ;;  %165 = vmatpush.bf16.msra.mxu1 %v908_v3  ;;  %v907_v12 = vld [vmem:[%s1457_s2] sm:$0xff]  ;;  %v914_v18 = vld [vmem:[%s1457_s2 + $0x38] sm:$0xff] }
   0x8   :  { %s696_s7 = sld [smem:[#allocation3 + $0x100]]  ;;  %231 = vmatpush.bf16.msra.mxu2 %v912_v4  ;;  %v911_v13 = vld [vmem:[%s1457_s2 + $0x20] sm:$0xff]  ;;  %v916_v22 = vld [vmem:[%s1457_s2 + $0x48] sm:$0xff]  ;;  %298 = vmatpush.bf16.msra.mxu3 %v914_v18  ;;  %v913_v23 = vld [vmem:[%s1457_s2 + $0x30] sm:$0xff] }
   0x9   :  { %s697_s8 = sld [smem:[#allocation3 + $0x180]]  ;;  %v915_v33 = vld [vmem:[%s1457_s2 + $0x40] sm:$0xff]  ;;  %v947_v61 = vld [vmem:[%s1459_s4 + $0xec] sm:$0xf0]  ;;  %v895_v0 = vld [vmem:[%s1459_s4 + $0xf0] sm:$0xf0] }
   0xa   :  { %s698_s0 = sld [smem:[#allocation3 + $0x200]]  ;;  %v893_v60 = vld [vmem:[%s1459_s4 + $0xe0] sm:$0xf]  ;;  %v945_v62 = vld [vmem:[%s1459_s4 + $0xe4] sm:$0xf] }
   0xb   :  { %s699_s9 = sld [smem:[#allocation3 + $0x280]]  ;;  %138 = vmatpush.bf16.msra.mxu0 %v909_v1  ;;  %166 = vmatpush.bf16.msra.mxu1 %v907_v12  ;;  %v894_v63 = vor.u32 %v947_v61, %v893_v60  ;;  %v901_v1 = vld [vmem:[%s1459_s4 + $0xe8] sm:$0xf]  ;;  %v898_v3 = vor.u32 %v945_v62, %v895_v0  ;;  %v887_v18 = vld [vmem:[%s1459_s4 + $0xd8] sm:$0xf0] }
   0xc   :  { %s39_s12 = scalar_lea.vmem %s1456_s1, %s38_s27  ;;  %s700_s13 = sld [smem:[#allocation3 + $0x300]]  ;;  %232 = vmatpush.bf16.msra.mxu2 %v911_v13  ;;  %299 = vmatpush.bf16.msra.mxu3 %v913_v23  ;;  %v927_v60 = vld [vmem:[%s1459_s4 + $0x4c] sm:$0xf0]  ;;  %v925_v61 = vld [vmem:[%s1459_s4 + $0x44] sm:$0xf] }
   0xd   :  { %v40_v2 = vld [vmem:[%s39_s12] sm:$0x1]  ;;  %s44_s16 = scalar_lea.vmem %s1456_s1, %s695_s28  ;;  %s1044_s17 = sld [smem:[#allocation3 + $0x380]]  ;;  %v821_v0 = vld [vmem:[%s1459_s4 + $0x48] sm:$0xf] }
   0xe   :  { %42 = vst.msk [vmem:[#allocation2] sm:$0x1] %vm41_vm0, %v40_v2  ;;  %v45_v5 = vld [vmem:[%s44_s16] sm:$0x1]  ;;  %s48_s24 = scalar_lea.vmem %s1456_s1, %s696_s7  ;;  %s1060_s28 = sld [smem:[#allocation3 + $0x1]] }
   0xf   :  { %46 = vst.msk [vmem:[#allocation2 + $0x1] sm:$0x1] %vm41_vm0, %v45_v5  ;;  %v49_v6 = vld [vmem:[%s48_s24] sm:$0x1]  ;;  %s52_s27 = scalar_lea.vmem %s1456_s1, %s697_s8  ;;  %s703_s7 = sld [smem:[#allocation3 + $0x81]]  ;;  %365 = vmatpush.bf16.msrb.mxu0 %v916_v22  ;;  %582 = vmatpush.bf16.msrb.mxu1 %v894_v63 }
  0x10   :  { %50 = vst.msk [vmem:[#allocation2 + $0x2] sm:$0x1] %vm41_vm0, %v49_v6  ;;  %v53_v7 = vld [vmem:[%s52_s27] sm:$0x1]  ;;  %s56_s10 = scalar_lea.vmem %s1456_s1, %s698_s0  ;;  %s704_s14 = sld [smem:[#allocation3 + $0x101]]  ;;  %595 = vmatpush.bf16.msrb.mxu2 %v898_v3 }
  0x11   :  { %54 = vst.msk [vmem:[#allocation2 + $0x3] sm:$0x1] %vm41_vm0, %v53_v7  ;;  %v57_v8 = vld [vmem:[%s56_s10] sm:$0x1]  ;;  %s60_s8 = scalar_lea.vmem %s1456_s1, %s699_s9  ;;  %s705_s19 = sld [smem:[#allocation3 + $0x181]] }
  0x12   :  { %58 = vst.msk [vmem:[#allocation2 + $0x4] sm:$0x1] %vm41_vm0, %v57_v8  ;;  %v61_v9 = vld [vmem:[%s60_s8] sm:$0x1]  ;;  %s64_s18 = scalar_lea.vmem %s1456_s1, %s700_s13  ;;  %s1079_s22 = sld [smem:[#allocation3 + $0x201]] }
  0x13   :  { %62 = vst.msk [vmem:[#allocation2 + $0x5] sm:$0x1] %vm41_vm0, %v61_v9  ;;  %v65_v10 = vld [vmem:[%s64_s18] sm:$0x1]  ;;  %s68_s21 = scalar_lea.vmem %s1456_s1, %s1044_s17  ;;  %s1082_s9 = sld [smem:[#allocation3 + $0x281]]  ;;  %366 = vmatpush.bf16.msrb.mxu0 %v915_v33 }
  0x14   :  { %66 = vst.msk [vmem:[#allocation2 + $0x6] sm:$0x1] %vm41_vm0, %v65_v10  ;;  %v69_v11 = vld [vmem:[%s68_s21] sm:$0x1]  ;;  %s1085_s13 = sld [smem:[#allocation3 + $0x301]]  ;;  %s78_s30 = scalar_lea.vmem %s1456_s1, %s1060_s28 }
  0x15   :  { %70 = vst.msk [vmem:[#allocation2 + $0x7] sm:$0x1] %vm41_vm0, %v69_v11  ;;  %s1087_s23 = sld [smem:[#allocation3 + $0x381]]  ;;  %s82_s12 = scalar_lea.vmem %s1456_s1, %s703_s7  ;;  %v79_v14 = vld [vmem:[%s78_s30] sm:$0x1] }
  0x16   :  { %s86_s16 = scalar_lea.vmem %s1456_s1, %s704_s14  ;;  %v83_v15 = vld [vmem:[%s82_s12] sm:$0x1]  ;;  %s732_s18 = sld [smem:[#allocation3 + $0x202]]  ;;  %v948_v2 = vld [vmem:[%s1459_s4 + $0xf4] sm:$0xf0] }
  0x17   :  { %s90_s20 = scalar_lea.vmem %s1456_s1, %s705_s19  ;;  %v87_v17 = vld [vmem:[%s86_s16] sm:$0x1]  ;;  %s731_s16 = sld [smem:[#allocation3 + $0x182]]  ;;  %v902_v4 = vor.u32 %v948_v2, %v901_v1  ;;  %v946_v5 = vld [vmem:[%s1459_s4 + $0xec] sm:$0xf] }
  0x18   :  { %s94_s24 = scalar_lea.vmem %s1456_s1, %s1079_s22  ;;  %v91_v19 = vld [vmem:[%s90_s20] sm:$0x1]  ;;  %s1124_s22 = sld [smem:[#allocation3 + $0x2]]  ;;  %v903_v6 = vld [vmem:[%s1459_s4 + $0xf8] sm:$0xf0] }
  0x19   :  { %s98_s17 = scalar_lea.vmem %s1456_s1, %s1082_s9  ;;  %v95_v21 = vld [vmem:[%s94_s24] sm:$0x1]  ;;  %s733_s0 = sld [smem:[#allocation3 + $0x282]]  ;;  %v906_v8 = vor.u32 %v946_v5, %v903_v6  ;;  %v943_v9 = vld [vmem:[%s1459_s4 + $0xcc] sm:$0xf0]  ;;  %608 = vmatpush.bf16.msrb.mxu3 %v902_v4 }
  0x1a   :  { %s102_s29 = scalar_lea.vmem %s1456_s1, %s1085_s13  ;;  %v99_v24 = vld [vmem:[%s98_s17] sm:$0x1]  ;;  %s729_s13 = sld [smem:[#allocation3 + $0x82]]  ;;  %v941_v10 = vld [vmem:[%s1459_s4 + $0xc4] sm:$0xf] }
  0x1b   :  { %s106_s10 = scalar_lea.vmem %s1456_s1, %s1087_s23  ;;  %v103_v25 = vld [vmem:[%s102_s29] sm:$0x1]  ;;  %s730_s23 = sld [smem:[#allocation3 + $0x102]]  ;;  %v879_v11 = vld [vmem:[%s1459_s4 + $0xd0] sm:$0xf0] }
  0x1c   :  { %v71_v16 = vld [vmem:[#allocation2] sm:$0xff]  ;;  %s734_s20 = sld [smem:[#allocation3 + $0x302]]  ;;  %s189_s12 = scalar_lea.vmem %s1456_s1, %s732_s18  ;;  %v882_v13 = vor.u32 %v941_v10, %v879_v11  ;;  %v815_v63 = vld [vmem:[%s1459_s4 + $0x50] sm:$0xf0]  ;;  %v928_v1 = vld [vmem:[%s1459_s4 + $0x54] sm:$0xf0] }
  0x1d   :  { %80 = vst.msk [vmem:[#allocation2] sm:$0x1] %vm41_vm0, %v79_v14  ;;  %v72_v20 = vpack.c.bf16 %v71_v16, %v71_v16  ;;  %v107_v26 = vld [vmem:[%s106_s10] sm:$0x1]  ;;  %s1144_s21 = sld [smem:[#allocation3 + $0x382]]  ;;  %s185_s9 = scalar_lea.vmem %s1456_s1, %s731_s16  ;;  %v818_v2 = vor.u32 %v925_v61, %v815_v63  ;;  %v822_v3 = vor.u32 %v928_v1, %v821_v0 }
  0x1e   :  { %84 = vst.msk [vmem:[#allocation2 + $0x1] sm:$0x1] %vm41_vm0, %v83_v15  ;;  %s173_s7 = scalar_lea.vmem %s1456_s1, %s1124_s22  ;;  %v186_v32 = vld [vmem:[%s185_s9] sm:$0x1]  ;;  %s746_s17 = sld [smem:[#allocation3 + $0x83]]  ;;  %596 = vmatpush.bf16.msrb.mxu2 %v882_v13 }
  0x1f   :  { %88 = vst.msk [vmem:[#allocation2 + $0x2] sm:$0x1] %vm41_vm0, %v87_v17  ;;  %727 = vmatmul.msk.bf16.vlgmr.msra.gmra.mxu1 %vm127_vm1, %v72_v20  ;;  %v174_v27 = vld [vmem:[%s173_s7] sm:$0x1]  ;;  %s193_s15 = scalar_lea.vmem %s1456_s1, %s733_s0  ;;  %s745_s0 = sld [smem:[#allocation3 + $0x3]] }
  0x20   :  { %92 = vst.msk [vmem:[#allocation2 + $0x3] sm:$0x1] %vm41_vm0, %v91_v19  ;;  %s177_s26 = scalar_lea.vmem %s1456_s1, %s729_s13  ;;  %v190_v34 = vld [vmem:[%s189_s12] sm:$0x1]  ;;  %s748_s2 = sld [smem:[#allocation3 + $0x183]] }
  0x21   :  { %96 = vst.msk [vmem:[#allocation2 + $0x4] sm:$0x1] %vm41_vm0, %v95_v21  ;;  %s181_s27 = scalar_lea.vmem %s1456_s1, %s730_s23  ;;  %v178_v28 = vld [vmem:[%s177_s26] sm:$0x1]  ;;  %s749_s26 = sld [smem:[#allocation3 + $0x203]] }
  0x22   :  { %100 = vst.msk [vmem:[#allocation2 + $0x5] sm:$0x1] %vm41_vm0, %v99_v24  ;;  %v182_v30 = vld [vmem:[%s181_s27] sm:$0x1]  ;;  %s197_s28 = scalar_lea.vmem %s1456_s1, %s734_s20  ;;  %s747_s20 = sld [smem:[#allocation3 + $0x103]] }
  0x23   :  { %104 = vst.msk [vmem:[#allocation2 + $0x6] sm:$0x1] %vm41_vm0, %v103_v25  ;;  %s201_s25 = scalar_lea.vmem %s1456_s1, %s1144_s21  ;;  %v194_v35 = vld [vmem:[%s193_s15] sm:$0x1]  ;;  %s750_s21 = sld [smem:[#allocation3 + $0x283]] }
  0x24   :  { %108 = vst.msk [vmem:[#allocation2 + $0x7] sm:$0x1] %vm41_vm0, %v107_v26  ;;  %v198_v36 = vld [vmem:[%s197_s28] sm:$0x1]  ;;  %s751_s14 = sld [smem:[#allocation3 + $0x303]]  ;;  %s244_s11 = scalar_lea.vmem %s1456_s1, %s746_s17 }
  0x25   :  { %v202_v37 = vld [vmem:[%s201_s25] sm:$0x1]  ;;  %s752_s19 = sld [smem:[#allocation3 + $0x383]]  ;;  %s240_s30 = scalar_lea.vmem %s1456_s1, %s745_s0  ;;  %v885_v14 = vld [vmem:[%s1459_s4 + $0xc8] sm:$0xf] }
  0x26   :  { %v241_v38 = vld [vmem:[%s240_s30] sm:$0x1]  ;;  %s252_s23 = scalar_lea.vmem %s1456_s1, %s748_s2  ;;  %s762_s29 = sld [smem:[#allocation3 + $0x4]]  ;;  %v944_v15 = vld [vmem:[%s1459_s4 + $0xd4] sm:$0xf0] }
  0x27   :  { %v245_v39 = vld [vmem:[%s244_s11] sm:$0x1]  ;;  %s256_s24 = scalar_lea.vmem %s1456_s1, %s749_s26  ;;  %s764_s30 = sld [smem:[#allocation3 + $0x104]]  ;;  %v942_v16 = vld [vmem:[%s1459_s4 + $0xcc] sm:$0xf]  ;;  %v886_v17 = vor.u32 %v944_v15, %v885_v14 }
  0x28   :  { %s248_s8 = scalar_lea.vmem %s1456_s1, %s747_s20  ;;  %v253_v43 = vld [vmem:[%s252_s23] sm:$0x1]  ;;  %s766_s9 = sld [smem:[#allocation3 + $0x204]]  ;;  %v890_v19 = vor.u32 %v942_v16, %v887_v18  ;;  %v939_v21 = vld [vmem:[%s1459_s4 + $0xac] sm:$0xf0] }
  0x29   :  { %v249_v41 = vld [vmem:[%s248_s8] sm:$0x1]  ;;  %s260_s25 = scalar_lea.vmem %s1456_s1, %s750_s21  ;;  %s763_s21 = sld [smem:[#allocation3 + $0x84]]  ;;  %609 = vmatpush.bf16.msrb.mxu3 %v886_v17  ;;  %v937_v22 = vld [vmem:[%s1459_s4 + $0xa4] sm:$0xf] }
  0x2a   :  { %s264_s20 = scalar_lea.vmem %s1456_s1, %s751_s14  ;;  %v257_v44 = vld [vmem:[%s256_s24] sm:$0x1]  ;;  %s765_s14 = sld [smem:[#allocation3 + $0x184]]  ;;  %v863_v24 = vld [vmem:[%s1459_s4 + $0xb0] sm:$0xf0] }
  0x2b   :  { %v109_v29 = vld [vmem:[#allocation2] sm:$0xff]  ;;  %s268_s26 = scalar_lea.vmem %s1456_s1, %s752_s19  ;;  %s767_s19 = sld [smem:[#allocation3 + $0x284]]  ;;  %v869_v25 = vld [vmem:[%s1459_s4 + $0xa8] sm:$0xf]  ;;  %v940_v26 = vld [vmem:[%s1459_s4 + $0xb4] sm:$0xf0] }
  0x2c   :  { %v110_v31 = vpack.c.bf16 %v109_v29, %v109_v29  ;;  %175 = vst.msk [vmem:[#allocation2] sm:$0x1] %vm41_vm0, %v174_v27  ;;  %v261_v45 = vld [vmem:[%s260_s25] sm:$0x1]  ;;  %s768_s10 = sld [smem:[#allocation3 + $0x304]]  ;;  %s307_s8 = scalar_lea.vmem %s1456_s1, %s762_s29  ;;  %v866_v27 = vor.u32 %v937_v22, %v863_v24 }
  0x2d   :  { %179 = vst.msk [vmem:[#allocation2 + $0x1] sm:$0x1] %vm41_vm0, %v178_v28  ;;  %v265_v46 = vld [vmem:[%s264_s20] sm:$0x1]  ;;  %s769_s11 = sld [smem:[#allocation3 + $0x384]]  ;;  %s315_s24 = scalar_lea.vmem %s1456_s1, %s764_s30  ;;  %v870_v28 = vor.u32 %v940_v26, %v869_v25 }
  0x2e   :  { %718 = vmatmul.msk.bf16.vlgmr.msra.gmra.mxu0 %vm127_vm1, %v110_v31  ;;  %183 = vst.msk [vmem:[#allocation2 + $0x2] sm:$0x1] %vm41_vm0, %v182_v30  ;;  %v269_v47 = vld [vmem:[%s268_s26] sm:$0x1]  ;;  %s323_s20 = scalar_lea.vmem %s1456_s1, %s766_s9  ;;  %v938_v29 = vld [vmem:[%s1459_s4 + $0xac] sm:$0xf]  ;;  %597 = vmatpush.bf16.msrb.mxu2 %v866_v27 }
  0x2f   :  { %187 = vst.msk [vmem:[#allocation2 + $0x3] sm:$0x1] %vm41_vm0, %v186_v32  ;;  %s311_s23 = scalar_lea.vmem %s1456_s1, %s763_s21  ;;  %v308_v48 = vld [vmem:[%s307_s8] sm:$0x1]  ;;  %621 = vmatpush.bf16.msra.mxu0 %v906_v8  ;;  %v871_v30 = vld [vmem:[%s1459_s4 + $0xb8] sm:$0xf0]  ;;  %610 = vmatpush.bf16.msrb.mxu3 %v870_v28 }
  0x30   :  { %191 = vst.msk [vmem:[#allocation2 + $0x4] sm:$0x1] %vm41_vm0, %v190_v34  ;;  %s319_s25 = scalar_lea.vmem %s1456_s1, %s765_s14  ;;  %v312_v49 = vld [vmem:[%s311_s23] sm:$0x1]  ;;  %v874_v31 = vor.u32 %v938_v29, %v871_v30  ;;  %v935_v34 = vld [vmem:[%s1459_s4 + $0x8c] sm:$0xf0] }
  0x31   :  { %195 = vst.msk [vmem:[#allocation2 + $0x5] sm:$0x1] %vm41_vm0, %v194_v35  ;;  %v316_v51 = vld [vmem:[%s315_s24] sm:$0x1]  ;;  %s327_s26 = scalar_lea.vmem %s1456_s1, %s767_s19  ;;  %v933_v35 = vld [vmem:[%s1459_s4 + $0x84] sm:$0xf] }
  0x32   :  { %199 = vst.msk [vmem:[#allocation2 + $0x6] sm:$0x1] %vm41_vm0, %v198_v36  ;;  %v320_v53 = vld [vmem:[%s319_s25] sm:$0x1]  ;;  %s331_s30 = scalar_lea.vmem %s1456_s1, %s768_s10  ;;  %v926_v4 = vld [vmem:[%s1459_s4 + $0x4c] sm:$0xf] }
  0x33   :  { %203 = vst.msk [vmem:[#allocation2 + $0x7] sm:$0x1] %vm41_vm0, %v202_v37  ;;  %v324_v54 = vld [vmem:[%s323_s20] sm:$0x1]  ;;  %s335_s9 = scalar_lea.vmem %s1456_s1, %s769_s11  ;;  %622 = vmatpush.bf16.msra.mxu0 %v890_v19  ;;  %v847_v37 = vld [vmem:[%s1459_s4 + $0x90] sm:$0xf0] }
  0x34   :  { %v328_v55 = vld [vmem:[%s327_s26] sm:$0x1]  ;;  %v823_v5 = vld [vmem:[%s1459_s4 + $0x58] sm:$0xf0]  ;;  %v921_v10 = vld [vmem:[%s1459_s4 + $0x24] sm:$0xf] }
  0x35   :  { %v332_v56 = vld [vmem:[%s331_s30] sm:$0x1]  ;;  %v805_v13 = vld [vmem:[%s1459_s4 + $0x28] sm:$0xf]  ;;  %v924_v14 = vld [vmem:[%s1459_s4 + $0x34] sm:$0xf0] }
  0x36   :  { %v336_v57 = vld [vmem:[%s335_s9] sm:$0x1]  ;;  %v806_v16 = vor.u32 %v924_v14, %v805_v13  ;;  %v922_v17 = vld [vmem:[%s1459_s4 + $0x2c] sm:$0xf]  ;;  %v807_v18 = vld [vmem:[%s1459_s4 + $0x38] sm:$0xf0] }
  0x37   :  { %v877_v7 = vld [vmem:[%s1459_s4 + $0xc0] sm:$0xf]  ;;  %623 = vmatpush.bf16.msra.mxu0 %v874_v31  ;;  %v810_v19 = vor.u32 %v922_v17, %v807_v18  ;;  %v917_v22 = vld [vmem:[%s1459_s4 + $0x4] sm:$0xf]  ;;  %v783_v24 = vld [vmem:[%s1459_s4 + $0x10] sm:$0xf0] }
  0x38   :  { %v878_v12 = vor.u32 %v943_v9, %v877_v7  ;;  %v861_v20 = vld [vmem:[%s1459_s4 + $0xa0] sm:$0xf]  ;;  %v826_v7 = vor.u32 %v926_v4, %v823_v5  ;;  %v923_v9 = vld [vmem:[%s1459_s4 + $0x2c] sm:$0xf0]  ;;  %v789_v25 = vld [vmem:[%s1459_s4 + $0x8] sm:$0xf]  ;;  %v786_v27 = vor.u32 %v917_v22, %v783_v24 }
  0x39   :  { %v862_v23 = vor.u32 %v939_v21, %v861_v20  ;;  %v845_v33 = vld [vmem:[%s1459_s4 + $0x80] sm:$0xf]  ;;  %v919_v21 = vld [vmem:[%s1459_s4 + $0xc] sm:$0xf0]  ;;  %v920_v26 = vld [vmem:[%s1459_s4 + $0x14] sm:$0xf0] }
  0x3a   :  { %v204_v40 = vld [vmem:[#allocation2] sm:$0xff]  ;;  %583 = vmatpush.bf16.msrb.mxu1 %v878_v12  ;;  %v846_v36 = vor.u32 %v935_v34, %v845_v33  ;;  %v799_v12 = vld [vmem:[%s1459_s4 + $0x30] sm:$0xf0]  ;;  %v790_v28 = vor.u32 %v920_v26, %v789_v25  ;;  %v918_v29 = vld [vmem:[%s1459_s4 + $0xc] sm:$0xf]  ;;  %s645_s9 = sshll.u32 %s1461_s6, 4  ;;  %s646_s9 = int_to_ptr.hbm [resolvable:$true] %s645_s9 }
  0x3b   :  { %v205_v42 = vpack.c.bf16 %v204_v40, %v204_v40  ;;  %242 = vst.msk [vmem:[#allocation2] sm:$0x1] %vm41_vm0, %v241_v38  ;;  %v853_v38 = vld [vmem:[%s1459_s4 + $0x88] sm:$0xf]  ;;  %v850_v40 = vor.u32 %v933_v35, %v847_v37  ;;  %v797_v8 = vld [vmem:[%s1459_s4 + $0x20] sm:$0xf]  ;;  %v802_v15 = vor.u32 %v921_v10, %v799_v12 }
  0x3c   :  { %246 = vst.msk [vmem:[#allocation2 + $0x1] sm:$0x1] %vm41_vm0, %v245_v39  ;;  %v936_v39 = vld [vmem:[%s1459_s4 + $0x94] sm:$0xf0]  ;;  %v798_v11 = vor.u32 %v923_v9, %v797_v8  ;;  %v781_v20 = vld [vmem:[%s1459_s4] sm:$0xf] }
  0x3d   :  { %744 = vmatmul.msk.bf16.vlgmr.msra.gmra.mxu2 %vm127_vm1, %v205_v42  ;;  %250 = vst.msk [vmem:[#allocation2 + $0x2] sm:$0x1] %vm41_vm0, %v249_v41  ;;  %v854_v41 = vor.u32 %v936_v39, %v853_v38  ;;  %v934_v42 = vld [vmem:[%s1459_s4 + $0x8c] sm:$0xf]  ;;  %v791_v30 = vld [vmem:[%s1459_s4 + $0x18] sm:$0xf0] }
  0x3e   :  { %254 = vst.msk [vmem:[#allocation2 + $0x3] sm:$0x1] %vm41_vm0, %v253_v43  ;;  %584 = vmatpush.bf16.msrb.mxu1 %v862_v23  ;;  %v855_v43 = vld [vmem:[%s1459_s4 + $0x98] sm:$0xf0]  ;;  %598 = vmatpush.bf16.msrb.mxu2 %v850_v40  ;;  %v782_v23 = vor.u32 %v919_v21, %v781_v20  ;;  %v794_v31 = vor.u32 %v918_v29, %v791_v30  ;;  %v951_v39 = vld [vmem:[%s1458_s3] ss:$0 sm:$0xff] }
  0x3f   :  { %258 = vst.msk [vmem:[#allocation2 + $0x4] sm:$0x1] %vm41_vm0, %v257_v44  ;;  %v829_v44 = vld [vmem:[%s1459_s4 + $0x60] sm:$0xf]  ;;  %611 = vmatpush.bf16.msrb.mxu3 %v854_v41  ;;  %s993_s3 = smov [#allocation6]  }
  0x40   :  { %262 = vst.msk [vmem:[#allocation2 + $0x5] sm:$0x1] %vm41_vm0, %v261_v45  ;;  %v858_v45 = vor.u32 %v934_v42, %v855_v43  ;;  %s643_s30 = sshll.u32 %s993_s3, 4  ;;  %s644_s30 = int_to_ptr.vmem [resolvable:$true] %s643_s30 }
  0x41   :  { %266 = vst.msk [vmem:[#allocation2 + $0x6] sm:$0x1] %vm41_vm0, %v265_v46 }
  0x42   :  { %270 = vst.msk [vmem:[#allocation2 + $0x7] sm:$0x1] %vm41_vm0, %v269_v47  ;;  %585 = vmatpush.bf16.msrb.mxu1 %v846_v36  ;;  %v931_v47 = vld [vmem:[%s1459_s4 + $0x6c] sm:$0xf0]  ;;  %624 = vmatpush.bf16.msra.mxu0 %v858_v45 }
  0x49   :  { %v271_v50 = vld [vmem:[#allocation2] sm:$0xff] }
  0x4a   :  { %v272_v52 = vpack.c.bf16 %v271_v50, %v271_v50  ;;  %309 = vst.msk [vmem:[#allocation2] sm:$0x1] %vm41_vm0, %v308_v48  ;;  %v929_v48 = vld [vmem:[%s1459_s4 + $0x64] sm:$0xf]  ;;  %v830_v50 = vor.u32 %v931_v47, %v829_v44 }
  0x4b   :  { %313 = vst.msk [vmem:[#allocation2 + $0x1] sm:$0x1] %vm41_vm0, %v312_v49  ;;  %v831_v49 = vld [vmem:[%s1459_s4 + $0x70] sm:$0xf0] }
  0x4c   :  { %761 = vmatmul.msk.bf16.vlgmr.msra.gmra.mxu3 %vm127_vm1, %v272_v52  ;;  %317 = vst.msk [vmem:[#allocation2 + $0x2] sm:$0x1] %vm41_vm0, %v316_v51  ;;  %v834_v51 = vor.u32 %v929_v48, %v831_v49  ;;  %v837_v52 = vld [vmem:[%s1459_s4 + $0x68] sm:$0xf]  ;;  %586 = vmatpush.bf16.msrb.mxu1 %v830_v50 }
  0x4d   :  { %321 = vst.msk [vmem:[#allocation2 + $0x3] sm:$0x1] %vm41_vm0, %v320_v53  ;;  %v932_v53 = vld [vmem:[%s1459_s4 + $0x74] sm:$0xf0] }
  0x4e   :  { %325 = vst.msk [vmem:[#allocation2 + $0x4] sm:$0x1] %vm41_vm0, %v324_v54  ;;  %v930_v54 = vld [vmem:[%s1459_s4 + $0x6c] sm:$0xf]  ;;  %599 = vmatpush.bf16.msrb.mxu2 %v834_v51 }
  0x4f   :  { %329 = vst.msk [vmem:[#allocation2 + $0x5] sm:$0x1] %vm41_vm0, %v328_v55  ;;  %v838_v55 = vor.u32 %v932_v53, %v837_v52 }
  0x50   :  { %333 = vst.msk [vmem:[#allocation2 + $0x6] sm:$0x1] %vm41_vm0, %v332_v56  ;;  %v839_v56 = vld [vmem:[%s1459_s4 + $0x78] sm:$0xf0] }
  0x51   :  { %337 = vst.msk [vmem:[#allocation2 + $0x7] sm:$0x1] %vm41_vm0, %v336_v57  ;;  %v842_v57 = vor.u32 %v930_v54, %v839_v56  ;;  %612 = vmatpush.bf16.msrb.mxu3 %v838_v55 }
  0x52   :  { %600 = vmatpush.bf16.msrb.mxu2 %v818_v2 }
  0x53   :  { %625 = vmatpush.bf16.msra.mxu0 %v842_v57 }
  0x55   :  { %613 = vmatpush.bf16.msrb.mxu3 %v822_v3 }
  0x56   :  { %601 = vmatpush.bf16.msrb.mxu2 %v802_v15 }
  0x57   :  { %626 = vmatpush.bf16.msra.mxu0 %v826_v7 }
  0x58   :  { %v338_v58 = vld [vmem:[#allocation2] sm:$0xff] }
  0x59   :  { %v339_v59 = vpack.c.bf16 %v338_v58, %v338_v58  ;;  %614 = vmatpush.bf16.msrb.mxu3 %v806_v16 }
  0x5a   :  { %602 = vmatpush.bf16.msrb.mxu2 %v786_v27 }
  0x5b   :  { %778 = vmatmul.msk.bf16.vlgmr.msrb.gmra.mxu0 %vm127_vm1, %v339_v59  ;;  %v813_v59 = vld [vmem:[%s1459_s4 + $0x40] sm:$0xf] }
  0x5c   :  { %v814_v62 = vor.u32 %v927_v60, %v813_v59  ;;  %627 = vmatpush.bf16.msra.mxu0 %v810_v19 }
  0x5d   :  { %615 = vmatpush.bf16.msrb.mxu3 %v790_v28 }
  0x5e   :  { %587 = vmatpush.bf16.msrb.mxu1 %v814_v62 }
  0x60   :  { %628 = vmatpush.bf16.msra.mxu0 %v794_v31 }
  0x62   :  { %588 = vmatpush.bf16.msrb.mxu1 %v798_v11 }
  0x66   :  { %589 = vmatpush.bf16.msrb.mxu1 %v782_v23 }
  0x9c   :  { %v1323_v32 = vpop.f32.mrf.mxu1 }
  0xa4   :  { %v170_v46 = vpop.f32.mrf.mxu1 }
  0xab   :  { %v140_v58 = vpop.f32.mrf.mxu0 }
  0xac   :  { %v169_v36 = vadd.f32 %v1323_v32, %v140_v58  ;;  %v412_v32 = vld [vmem:[%s1460_s5] sm:$0xf] }
  0xad   :  { %v414_v47 = vperm.slane %v412_v32, 0  ;;  %v417_v48 = vperm.slane %v412_v32, 3  ;;  %v415_v53 = vperm.slane %v412_v32, 1  ;;  %v416_v54 = vperm.slane %v412_v32, 2 }
  0xb3   :  { %v142_v6 = vpop.f32.mrf.mxu0 }
  0xc0   :  { %v234_v33 = vpop.f32.mrf.mxu2 }
  0xc1   :  { %v238_v37 = vadd.f32 %v234_v33, %v169_v36 }
  0xc8   :  { %v236_v34 = vpop.f32.mrf.mxu2 }
  0xcf   :  { %v301_v35 = vpop.f32.mrf.mxu3 }
  0xd0   :  { %v305_v38 = vadd.f32 %v301_v35, %v238_v37 }
  0xd7   :  { %v303_v40 = vpop.f32.mrf.mxu3 }
  0xd8   :  { %v368_v41 = vpop.f32.mrf.mxu0 }
  0xd9   :  { %v372_v42 = vadd.f32 %v368_v41, %v305_v38 }
  0xdb   :  { %v377_v43 = vadd.f32 %v951_v39, %v372_v42 }
  0xdd   :  { %v378_v44 = vmax.f32 %v377_v43, 0.0 }
  0xdf   :  { %v379_v45 = vpack.c.bf16 %v378_v44, %v378_v44 }
  0xe0   :  { %v370_v46 = vpop.f32.mrf.mxu0 }
  0xe1   :  { %590 = vmatmul.bf16.vlgmr.msrb.gmra.mxu1 %v379_v45  ;;  %603 = vmatmul.bf16.vlgmr.msrb.gmra.mxu2 %v379_v45 }
  0xe2   :  { %616 = vmatmul.bf16.vlgmr.msrb.gmra.mxu3 %v379_v45  ;;  %629 = vmatmul.bf16.vlgmr.msra.gmra.mxu0 %v379_v45 }
 0x15e   :  { %v591_v49 = vpop.f32.mrf.mxu1 }
 0x15f   :  { %v592_v50 = vadd.f32 %v591_v49, %v414_v47  ;;  %v630_v51 = vpop.f32.mrf.mxu0 }
 0x160   :  { %v631_v52 = vadd.f32 %v630_v51, %v417_v48 }
 0x161   :  { %634 = vst [vmem:[#allocation6] sm:$0xff] %v592_v50 }
 0x162   :  { %637 = vst [vmem:[#allocation6 + $0x18] sm:$0xff] %v631_v52 }
 0x164   :  { %v604_v55 = vpop.f32.mrf.mxu2 }
 0x165   :  { %v605_v56 = vadd.f32 %v604_v55, %v415_v53  ;;  %v617_v57 = vpop.f32.mrf.mxu3 }
 0x166   :  { %v618_v58 = vadd.f32 %v617_v57, %v416_v54  ;;  %v593_v59 = vpop.f32.mrf.mxu1 }
 0x167   :  { %635 = vst [vmem:[#allocation6 + $0x8] sm:$0xff] %v605_v56  ;;  %v632_v60 = vpop.f32.mrf.mxu0 }
 0x168   :  { %636 = vst [vmem:[#allocation6 + $0x10] sm:$0xff] %v618_v58 }
 0x169   :  { %648 = dma.vmem_to_hbm [thread:$0]  %s644_s30, 512, %s646_s9, [#allocation4]  }
 0x16c   :  { %v606_v61 = vpop.f32.mrf.mxu2 }
 0x16d   :  { %v619_v62 = vpop.f32.mrf.mxu3 }
 0x16e   :  { %990 = dma.done.wait [#allocation4], 512  }
 0x16f   :  { %991 = vsyncadd [#allocation4], 4294966784 }
 0x170   :  { %653 = vsyncpa [#allocation4], 1 }
 0x171   :  { %654 = vsyncpa [#allocation5], 1 }

</bundles_post_ra>
